<compile_context>
chip_gen: v7x
topology: tpu7x:2x2x1
jax: 0.10.0
libtpu: 0.0.40
codegen_flags: <defaults>
</compile_context>

<pallas_src>
import math
import functools

import jax
import jax.numpy as jnp
from jax.experimental import pallas as pl
from jax.experimental.pallas import tpu as pltpu


# int32 views of the usual hash constants (0x9E3779B9, 0x85EBCA6B, 0xC2B2AE35)
_C1 = -1640531527
_C2 = -2048144789
_C3 = -1028477387


def _make_pe(d_model: int, max_len: int) -> jnp.ndarray:
    """Builds the positional-encoding buffer, matching the torch __init__."""
    position = jnp.arange(max_len, dtype=jnp.float32)[:, None]            # [max_len, 1]
    div_term = jnp.exp(
        jnp.arange(0, d_model, 2, dtype=jnp.float32)
        * (-math.log(10000.0) / d_model)
    )
    n_odd = d_model // 2
    pe = jnp.zeros((max_len, 1, d_model), dtype=jnp.float32)
    pe = pe.at[:, 0, 0::2].set(jnp.sin(position * div_term))
    pe = pe.at[:, 0, 1::2].set(jnp.cos(position * div_term[:n_odd]))
    return pe


def _srl(x, k: int):
    """Logical right shift for int32 values (arithmetic shift + mask)."""
    return (x >> k) & jnp.int32((1 << (32 - k)) - 1)


def _pos_enc_kernel(seed_ref, x_ref, pe_ref, o_ref, *,
                    dropout_p: float, training: bool, block_rows: int):
    # f32 compute in-register even if the HBM storage is bf16 (v5e-safe).
    x = x_ref[...].astype(jnp.float32)        # (TS, B, D)
    pe = pe_ref[...].astype(jnp.float32)      # (TS, 1, D) -> broadcasts over batch
    y = x + pe

    if training and dropout_p > 0.0:
        # TODO(synk): dropout mask is only statistically equivalent to
        # torch.nn.Dropout (different RNG stream).
        _, b, d = y.shape
        # Global element index: unique across the whole tensor, independent of tiling.
        i0 = jax.lax.broadcasted_iota(jnp.int32, y.shape, 0)
        i1 = jax.lax.broadcasted_iota(jnp.int32, y.shape, 1)
        i2 = jax.lax.broadcasted_iota(jnp.int32, y.shape, 2)
        row = i0 + jnp.int32(block_rows) * pl.program_id(0)
        idx = row * jnp.int32(b * d) + i1 * jnp.int32(d) + i2
        # splitmix32 / murmur3-style integer hash -> uniform bits (pure VPU int ops,
        # wrap-around int32 arithmetic is well defined in XLA).
        h = idx + seed_ref[0] * jnp.int32(_C1)
        h = h ^ _srl(h, 16)
        h = h * jnp.int32(_C2)
        h = h ^ _srl(h, 13)
        h = h * jnp.int32(_C3)
        h = h ^ _srl(h, 16)
        # Top 24 bits -> uniform float in [0, 1).
        u = _srl(h, 8).astype(jnp.float32) * jnp.float32(1.0 / (1 << 24))
        keep = (u >= jnp.float32(dropout_p)).astype(jnp.float32)
        # Inverted dropout: multiply by mask*scale (no where / zeros block).
        y = y * (keep * jnp.float32(1.0 / (1.0 - dropout_p)))

    o_ref[...] = y.astype(o_ref.dtype)


def _pick_block_rows(S: int, B: int, D: int, itemsize: int,
                     target_bytes: int = 2 * 1024 * 1024) -> int:
    """~1-4 MiB per x block (HBM-roofline sweet spot), rounded to 8 rows."""
    rows = max(1, target_bytes // max(1, B * D * itemsize))
    rows = min(S, rows)
    if rows >= 8:
        rows = (rows // 8) * 8
    return rows


def positional_encoding(x: jnp.ndarray, pe: jnp.ndarray, *,
                        dropout_p: float = 0.1, training: bool = False,
                        seed: int = 0) -> jnp.ndarray:
    """x: [seq_len, batch, d_model]; pe: FULL [max_len, 1, d_model] buffer."""
    S, B, D = x.shape
    itemsize = x.dtype.itemsize
    ts = _pick_block_rows(S, B, D, itemsize)
    grid = (pl.cdiv(S, ts),)
    seed_arr = jnp.array([seed], dtype=jnp.int32)

    kernel = functools.partial(
        _pos_enc_kernel, dropout_p=float(dropout_p),
        training=bool(training), block_rows=ts)

    cost = pl.CostEstimate(
        flops=S * B * D,
        transcendentals=0,
        bytes_accessed=2 * S * B * D * itemsize + S * D * pe.dtype.itemsize)

    return pl.pallas_call(
        kernel,
        out_shape=jax.ShapeDtypeStruct((S, B, D), x.dtype),
        grid_spec=pltpu.PrefetchScalarGridSpec(
            num_scalar_prefetch=1,                 # seed -> SMEM
            grid=grid,
            in_specs=[
                pl.BlockSpec((ts, B, D), lambda i, _: (i, 0, 0)),   # x tile
                # Window directly into the full pe buffer: no wrapper-side pe[:S] copy.
                pl.BlockSpec((ts, 1, D), lambda i, _: (i, 0, 0)),   # pe tile
            ],
            out_specs=pl.BlockSpec((ts, B, D), lambda i, _: (i, 0, 0)),
        ),
        compiler_params=pltpu.CompilerParams(
            dimension_semantics=("parallel",),      # shard grid over the 2 TCs on v7x
            vmem_limit_bytes=32 * 1024 * 1024),
        cost_estimate=cost,
    )(seed_arr, x, pe)


if __name__ == "__main__":
    # Small shapes consistent with the module's forward: [seq_len, batch, d_model]
    seq_len, batch, d_model = 8, 2, 32
    max_len = 64

    key = jax.random.PRNGKey(0)
    x = jax.random.normal(key, (seq_len, batch, d_model), dtype=jnp.float32)
    pe = _make_pe(d_model, max_len)

    # Eval-mode forward (dropout is identity) -- deterministic, checkable.
    out = positional_encoding(x, pe, dropout_p=0.1, training=False)
    out = jax.block_until_ready(out)

    ref = x + pe[:seq_len]
    assert jnp.allclose(out, ref, atol=1e-6), "eval-mode mismatch vs reference"

    # Training path: every surviving element equals ref/(1-p), dropped ones are 0.
    p = 0.1
    out_train = jax.block_until_ready(
        positional_encoding(x, pe, dropout_p=p, training=True, seed=42))
    scaled = ref / (1.0 - p)
    ok = (jnp.isclose(out_train, 0.0, atol=1e-6)
          | jnp.isclose(out_train, scaled, atol=1e-4, rtol=1e-4))
    assert bool(jnp.all(ok)), "training-mode dropout output inconsistent"

    print("KERNEL_OK")
</pallas_src>

<mosaic_0001>
module attributes {stable_mosaic.version = 11 : i64} {
  func.func @_pos_enc_kernel(%arg0: i32, %arg1: memref<1xi32, #tpu.memory_space<smem>>, %arg2: memref<8x2x32xf32, #tpu.memory_space<vmem>>, %arg3: memref<8x1x32xf32, #tpu.memory_space<vmem>>, %arg4: memref<8x2x32xf32, #tpu.memory_space<vmem>>) attributes {dimension_semantics = [#tpu.dimension_semantics<parallel>], iteration_bounds = array<i64: 1>, scalar_prefetch = 1 : i64, scratch_operands = 0 : i64, tpu.core_type = #tpu.core_type<tc>, window_params = [{transform_indices = @transform_0, window_bounds = array<i64: 8, 2, 32>}, {transform_indices = @transform_1, window_bounds = array<i64: 8, 1, 32>}, {transform_indices = @transform_2, window_bounds = array<i64: 8, 2, 32>}]} {
    %c0 = arith.constant 0 : index
    %c0_0 = arith.constant 0 : index
    %c0_1 = arith.constant 0 : index
    %0 = vector.load %arg2[%c0, %c0_0, %c0_1] : memref<8x2x32xf32, #tpu.memory_space<vmem>>, vector<8x2x32xf32>
    %c0_2 = arith.constant 0 : index
    %c0_3 = arith.constant 0 : index
    %c0_4 = arith.constant 0 : index
    %1 = vector.load %arg3[%c0_2, %c0_3, %c0_4] : memref<8x1x32xf32, #tpu.memory_space<vmem>>, vector<8x1x32xf32>
    %2 = vector.broadcast %1 : vector<8x1x32xf32> to vector<8x2x32xf32>
    %3 = arith.addf %0, %2 : vector<8x2x32xf32>
    %c0_5 = arith.constant 0 : index
    %c0_6 = arith.constant 0 : index
    %c0_7 = arith.constant 0 : index
    %4 = vector.load %arg4[%c0_5, %c0_6, %c0_7] : memref<8x2x32xf32, #tpu.memory_space<vmem>>, vector<8x2x32xf32>
    tpu.vector_store %arg4[%c0_5, %c0_6, %c0_7], %3 {strides = array<i32>} : memref<8x2x32xf32, #tpu.memory_space<vmem>>, vector<8x2x32xf32>,
    return
  }
  func.func @transform_0(%arg0: i32, %arg1: memref<1xi32, #tpu.memory_space<smem>>) -> (i32, i32, i32) {
    %c0_i32 = arith.constant 0 : i32
    %c0_i32_0 = arith.constant 0 : i32
    %c0_i32_1 = arith.constant 0 : i32
    return %arg0, %c0_i32, %c0_i32_0 : i32, i32, i32
  }
  func.func @transform_1(%arg0: i32, %arg1: memref<1xi32, #tpu.memory_space<smem>>) -> (i32, i32, i32) {
    %c0_i32 = arith.constant 0 : i32
    %c0_i32_0 = arith.constant 0 : i32
    %c0_i32_1 = arith.constant 0 : i32
    return %arg0, %c0_i32, %c0_i32_0 : i32, i32, i32
  }
  func.func @transform_2(%arg0: i32, %arg1: memref<1xi32, #tpu.memory_space<smem>>) -> (i32, i32, i32) {
    %c0_i32 = arith.constant 0 : i32
    %c0_i32_0 = arith.constant 0 : i32
    %c0_i32_1 = arith.constant 0 : i32
    return %arg0, %c0_i32, %c0_i32_0 : i32, i32, i32
  }
}

</mosaic_0001>

<bundles_post_ra>
// kernel: tpu_custom_call.1
= control target key start
LH: loop header
LB: loop body
LE: loop exit
PB: predicated region body
PF: predicated region fallthrough
CT: control target
= control target key end

     0   :  { %vm86_vm0 = vcmask 254976   ;;  %s237_s0 = inlined_call_operand.<no memory space> [shape: s32[1], index: 0, kind: input, shape index: {}]   ;;  %s238_s1 = inlined_call_operand.vmem [shape: f32[8,2,32], index: 1, kind: input, shape index: {}]   ;;  %s239_s2 = inlined_call_operand.vmem [shape: f32[64,1,32], index: 2, kind: input, shape index: {}]   ;;  %s240_s3 = inlined_call_operand.hbm [shape: f32[8,2,32], index: 3, kind: output, shape index: {}]  }
   0x1   :  { %v14_v0 = vld [vmem:[%s238_s1] sm:$0x3]  ;;  %v15_v3 = vld [vmem:[%s238_s1 + $0x2] sm:$0x3]  ;;  %v16_v5 = vld [vmem:[%s238_s1 + $0x4] sm:$0x3] }
   0x2   :  { %v111_v1 = vld [vmem:[%s239_s2] ss:$0 sm:$0xff]  ;;  %v112_v4 = vld [vmem:[%s239_s2 + $0x1] ss:$0 sm:$0xff]  ;;  %v113_v7 = vld [vmem:[%s239_s2 + $0x2] ss:$0 sm:$0xff] }
   0x3   :  { %v78_v2 = vadd.f32 %v111_v1, %v14_v0  ;;  %v79_v6 = vadd.f32 %v112_v4, %v15_v3  ;;  %v17_v8 = vld [vmem:[%s238_s1 + $0x6] sm:$0x3]  ;;  %v114_v9 = vld [vmem:[%s239_s2 + $0x3] ss:$0 sm:$0xff]  ;;  %v80_v10 = vadd.f32 %v113_v7, %v16_v5  ;;  %v18_v12 = vld [vmem:[%s238_s1 + $0x8] sm:$0x3] }
   0x4   :  { %v81_v11 = vadd.f32 %v114_v9, %v17_v8  ;;  %v115_v13 = vld [vmem:[%s239_s2 + $0x4] ss:$0 sm:$0xff]  ;;  %v19_v14 = vld [vmem:[%s238_s1 + $0xa] sm:$0x3]  ;;  %v116_v16 = vld [vmem:[%s239_s2 + $0x5] ss:$0 sm:$0xff] }
   0x5   :  { %87 = vst.msk [vmem:[#allocation4] sm:$0x3] %vm86_vm0, %v78_v2  ;;  %88 = vst.msk [vmem:[#allocation4 + $0x2] sm:$0x3] %vm86_vm0, %v79_v6  ;;  %v82_v15 = vadd.f32 %v115_v13, %v18_v12  ;;  %v20_v17 = vld [vmem:[%s238_s1 + $0xc] sm:$0x3]  ;;  %v83_v19 = vadd.f32 %v116_v16, %v19_v14 }
   0x6   :  { %v117_v18 = vld [vmem:[%s239_s2 + $0x6] ss:$0 sm:$0xff]  ;;  %89 = vst.msk [vmem:[#allocation4 + $0x4] sm:$0x3] %vm86_vm0, %v80_v10  ;;  %90 = vst.msk [vmem:[#allocation4 + $0x6] sm:$0x3] %vm86_vm0, %v81_v11 }
   0x7   :  { %v84_v20 = vadd.f32 %v117_v18, %v20_v17  ;;  %v21_v21 = vld [vmem:[%s238_s1 + $0xe] sm:$0x3]  ;;  %v118_v22 = vld [vmem:[%s239_s2 + $0x7] ss:$0 sm:$0xff] }
   0x8   :  { %9 = vsyncpa [#allocation5], 0  ;;  %91 = vst.msk [vmem:[#allocation4 + $0x8] sm:$0x3] %vm86_vm0, %v82_v15  ;;  %v85_v23 = vadd.f32 %v118_v22, %v21_v21  ;;  %s146_s0 = smov [#allocation4]  }
   0x9   :  { %s100_s16 = sshll.u32 %s146_s0, 4  ;;  %92 = vst.msk [vmem:[#allocation4 + $0xa] sm:$0x3] %vm86_vm0, %v83_v19  ;;  %93 = vst.msk [vmem:[#allocation4 + $0xc] sm:$0x3] %vm86_vm0, %v84_v20  ;;  %s101_s16 = int_to_ptr.vmem [resolvable:$true] %s100_s16 }
   0xa   :  { %94 = vst.msk [vmem:[#allocation4 + $0xe] sm:$0x3] %vm86_vm0, %v85_v23  ;;  %s122_s17 = scalar_lea.vmem %s101_s16, 256  ;;  %p127_p1 = scmp.lt.s32.totalorder %s101_s16, %s101_s16 }
   0xb   :  { %p123_p0 = scmp.ne.s32.totalorder %s101_s16, %s122_s17  ;;  %p128_p2 = scmp.lt.s32.totalorder %s122_s17, %s122_s17 }
   0xd   :  { %p129_p3 = por %p128_p2, %p127_p1 }
   0xf   :  { %p130_p4 = pnand %p129_p3, %p123_p0 }
  0x11   :  { %133 = shalt.err (!%p130_p4)
}
  0x12   :  { %s134_s18 = scalar_lea.hbm %s240_s3, 256 }
  0x13   :  { %p135_p5 = scmp.ne.s32.totalorder %s240_s3, %s134_s18  ;;  %p138_p6 = scmp.lt.u32.totalorder %s134_s18, %s240_s3 }
  0x15   :  { %p140_p7 = pnand %p138_p6, %p135_p5 }
  0x17   :  { %143 = shalt.err (!%p140_p7)
}
  0x18   :  { %s147_s23 = smov 32   ;;  %s148_s24 = smov 2  }
  0x19   :  { %106 = dma.vmem_to_hbm [thread:$0]  %s101_s16, 256, %s240_s3, [#allocation5], %s147_s23, %s147_s23, %s148_s24  }
  0x1a   :  { %144 = dma.done.wait [#allocation5], 256  }
  0x1b   :  { %145 = vsyncadd [#allocation5], 4294967040 }
  0x1c   :  { %110 = vsyncpa [#allocation5], 1 }

</bundles_post_ra>
